<compile_context>
chip_gen: v5e
topology: v5e:2x2
jax: 0.10.0
libtpu: 0.0.40
codegen_flags: <defaults>
</compile_context>

<pallas_src>
import jax
import jax.numpy as jnp
from jax import lax
from jax.experimental import pallas as pl
from jax.experimental.pallas import tpu as pltpu

_EPS = 1e-8  # nn.CosineSimilarity default eps


def _round_up(a: int, b: int) -> int:
    return ((a + b - 1) // b) * b


def _sublane_multiple(dtype) -> int:
    # packed-sublane multiple: f32 -> 8, bf16/f16 -> 16, int8/fp8 -> 32
    return {4: 8, 2: 16, 1: 32}.get(jnp.dtype(dtype).itemsize, 8)


def _footprint_bytes(tm, tn, kh, xb, yb, ob) -> int:
    # double-buffered inputs/outputs + f32 accumulator scratch + scale vectors
    return (2 * tm * kh * xb
            + 2 * tn * kh * yb
            + 2 * tm * tn * ob
            + tm * tn * 4
            + 2 * (tm + tn) * 4)


# Per-generation tiling config: target tm/tn, VMEM footprint cap for tile
# selection, and a ceiling for the explicit vmem_limit_bytes request.
_GEN_CONFIG = {
    "v5e": dict(tm=256, tn=256, cap=64 << 20, limit_ceiling=112 << 20),
    "v6e": dict(tm=1024, tn=256, cap=80 << 20, limit_ceiling=112 << 20),
    "v7x": dict(tm=512, tn=256, cap=40 << 20, limit_ceiling=56 << 20),
}
# Unknown / older chips: stay under every generation's default scoped limit
# and don't override vmem_limit_bytes.
_DEFAULT_CONFIG = dict(tm=256, tn=256, cap=12 << 20, limit_ceiling=None)


def _tpu_generation():
    try:
        kind = jax.devices()[0].device_kind.lower()
    except Exception:
        return None
    if "v6" in kind:
        return "v6e"
    if "7x" in kind or "v7" in kind:
        return "v7x"
    if "v5e" in kind or "v5 lite" in kind or "v5lite" in kind:
        return "v5e"
    return None


def _sim_kernel(x_ref, y_ref, sx_ref, sy_ref, o_ref, acc_ref):
    """One (tm, tn) output tile; k axis accumulates over H chunks.

    x_ref: (tm, kh) native dtype, y_ref: (tn, kh) native dtype,
    sx_ref: (tm, 1) f32 (1/temp folded in), sy_ref: (1, tn) f32,
    o_ref: (tm, tn), acc_ref: (tm, tn) f32 scratch.
    """
    k = pl.program_id(2)

    @pl.when(k == 0)
    def _():
        acc_ref[...] = jnp.zeros_like(acc_ref)

    # (tm, kh) x (tn, kh), contracting dim 1 of both -> (tm, tn).
    # Native-dtype MXU path with f32 accumulation; no y transpose.
    acc_ref[...] += lax.dot_general(
        x_ref[...], y_ref[...],
        dimension_numbers=(((1,), (1,)), ((), ())),
        preferred_element_type=jnp.float32,
    )

    @pl.when(k == pl.num_programs(2) - 1)
    def _():
        # Row-broadcast (tm,1) * lane-broadcast (1,tn) scale on the f32 tile.
        o_ref[...] = (acc_ref[...] * sx_ref[...] * sy_ref[...]).astype(o_ref.dtype)


def similarity(x, y, temp: float, *, out_dtype=None):
    """Pallas implementation of Similarity.forward for the broadcast case
    x: (N, 1, H), y: (1, M, H) -> (N, M).  Also accepts (N, H) / (M, H)."""
    # TODO(synk): only the pairwise (N,1,H) x (1,M,H) / 2-D case is kernelized;
    # general CosineSimilarity broadcasting is out of scope here.
    if x.ndim == 3:
        assert x.shape[1] == 1, "expected x of shape (N, 1, H)"
        x2d = x[:, 0, :]
    else:
        x2d = x
    if y.ndim == 3:
        assert y.shape[0] == 1, "expected y of shape (1, M, H)"
        y2d = y[0, :, :]
    else:
        y2d = y

    N, H = x2d.shape
    M, Hy = y2d.shape
    assert H == Hy, "hidden dims must match"

    if out_dtype is None:
        out_dtype = jnp.result_type(x2d.dtype, y2d.dtype)

    # ---- Hoisted normalization (one cheap XLA pass, O(N*H + M*H)) ----------
    # 1/max(||x||, eps) with 1/temp folded in; 1/max(||y||, eps).
    inv_temp = 1.0 / float(temp)
    eps_sq = jnp.float32(_EPS * _EPS)
    xf = x2d.astype(jnp.float32)
    yf = y2d.astype(jnp.float32)
    sx = (lax.rsqrt(jnp.maximum(jnp.sum(xf * xf, axis=-1, keepdims=True), eps_sq))
          * inv_temp)                                          # (N, 1) f32
    sy = lax.rsqrt(jnp.maximum(jnp.sum(yf * yf, axis=-1), eps_sq))[None, :]  # (1, M) f32

    # ---- Per-generation tile selection --------------------------------------
    gen = _tpu_generation()
    cfg = _GEN_CONFIG.get(gen, _DEFAULT_CONFIG)
    xb = jnp.dtype(x2d.dtype).itemsize
    yb = jnp.dtype(y2d.dtype).itemsize
    ob = jnp.dtype(out_dtype).itemsize
    sub = _sublane_multiple(x2d.dtype)
    cap = cfg["cap"]

    tn = min(cfg["tn"], _round_up(M, 128))      # lane-dense output tiles
    tm = min(cfg["tm"], _round_up(N, sub))      # packed-sublane multiple

    # H ("k") tiling first so tm (the arithmetic-intensity lever) stays large.
    kh = H
    if _footprint_bytes(tm, tn, kh, xb, yb, ob) > cap and H > 128:
        kh = 512
        while kh > 128 and (_footprint_bytes(tm, tn, kh, xb, yb, ob) > cap or kh >= H):
            kh //= 2
    while _footprint_bytes(tm, tn, kh, xb, yb, ob) > cap and tm > sub:
        tm = max(sub, tm // 2)

    # ---- Padding so the grid divides evenly ---------------------------------
    n_pad = _round_up(N, tm)
    m_pad = _round_up(M, tn)
    h_pad = H if kh == H else _round_up(H, kh)
    if n_pad != N or h_pad != H:
        x2d = jnp.pad(x2d, ((0, n_pad - N), (0, h_pad - H)))
    if m_pad != M or h_pad != H:
        y2d = jnp.pad(y2d, ((0, m_pad - M), (0, h_pad - H)))
    if n_pad != N:
        sx = jnp.pad(sx, ((0, n_pad - N), (0, 0)))   # padded rows -> scale 0
    if m_pad != M:
        sy = jnp.pad(sy, ((0, 0), (0, m_pad - M)))

    ni, nj, nk = n_pad // tm, m_pad // tn, h_pad // kh
    grid = (ni, nj, nk)  # i outer, j middle, k inner (reduction innermost)

    grid_spec = pltpu.PrefetchScalarGridSpec(
        num_scalar_prefetch=0,
        grid=grid,
        in_specs=[
            pl.BlockSpec((tm, kh), lambda i, j, k: (i, k)),   # x: resident over j
            pl.BlockSpec((tn, kh), lambda i, j, k: (j, k)),   # y: streamed
            pl.BlockSpec((tm, 1), lambda i, j, k: (i, 0)),    # x scale (f32)
            pl.BlockSpec((1, tn), lambda i, j, k: (0, j)),    # y scale (f32)
        ],
        out_specs=pl.BlockSpec((tm, tn), lambda i, j, k: (i, j)),
        scratch_shapes=[pltpu.VMEM((tm, tn), jnp.float32)],
    )

    # ---- Explicit VMEM limit + cost estimate --------------------------------
    footprint = _footprint_bytes(tm, tn, kh, xb, yb, ob)
    vmem_limit_bytes = None
    if cfg["limit_ceiling"] is not None:
        vmem_limit_bytes = int(min(cfg["limit_ceiling"],
                                   max(int(footprint * 1.5), 32 << 20)))

    cp_kwargs = dict(dimension_semantics=("parallel", "parallel", "arbitrary"))
    if vmem_limit_bytes is not None:
        cp_kwargs["vmem_limit_bytes"] = vmem_limit_bytes

    cost = pl.CostEstimate(
        flops=2 * n_pad * m_pad * h_pad + 2 * n_pad * m_pad,
        bytes_accessed=(n_pad * h_pad * xb
                        + ni * m_pad * h_pad * yb     # y re-streamed per i block
                        + n_pad * m_pad * ob
                        + (n_pad + m_pad) * 4),
        transcendentals=0,
    )

    out = pl.pallas_call(
        _sim_kernel,
        out_shape=jax.ShapeDtypeStruct((n_pad, m_pad), out_dtype),
        grid_spec=grid_spec,
        compiler_params=pltpu.CompilerParams(**cp_kwargs),
        cost_estimate=cost,
    )(x2d, y2d, sx, sy)

    return out[:N, :M]


def similarity_ref(x, y, temp: float):
    """Plain-JAX reference mirroring torch.nn.CosineSimilarity(dim=-1) / temp."""
    xb, yb = jnp.broadcast_arrays(x, y)
    xn = jnp.maximum(jnp.linalg.norm(xb, axis=-1, keepdims=True), _EPS)
    yn = jnp.maximum(jnp.linalg.norm(yb, axis=-1, keepdims=True), _EPS)
    return jnp.sum((xb / xn) * (yb / yn), axis=-1) / temp


if __name__ == "__main__":
    key = jax.random.PRNGKey(0)
    kx, ky = jax.random.split(key)
    temp = 0.05

    # SimCSE-style broadcast shapes: (N, 1, H) vs (1, M, H) -> (N, M)
    N, M, H = 8, 8, 32
    x = jax.random.normal(kx, (N, 1, H), dtype=jnp.float32)
    y = jax.random.normal(ky, (1, M, H), dtype=jnp.float32)

    out = jax.block_until_ready(similarity(x, y, temp))
    ref = similarity_ref(x, y, temp)
    assert out.shape == (N, M)
    assert jnp.allclose(out, ref, atol=1e-4, rtol=1e-4), "f32 mismatch vs reference"

    # bf16 path with padding (N not a multiple of the bf16 sublane pack, M < 128)
    N2, M2, H2 = 24, 40, 160
    kx2, ky2 = jax.random.split(ky)
    x2 = jax.random.normal(kx2, (N2, 1, H2), dtype=jnp.bfloat16)
    y2 = jax.random.normal(ky2, (1, M2, H2), dtype=jnp.bfloat16)
    out2 = jax.block_until_ready(similarity(x2, y2, temp, out_dtype=jnp.float32))
    ref2 = similarity_ref(x2.astype(jnp.float32), y2.astype(jnp.float32), temp)
    assert out2.shape == (N2, M2)
    assert jnp.allclose(out2, ref2, atol=5e-2, rtol=1e-2), "bf16 mismatch vs reference"

    print("KERNEL_OK")
</pallas_src>

<mosaic_0001>
module attributes {stable_mosaic.version = 11 : i64} {
  func.func @_sim_kernel(%arg0: i32, %arg1: i32, %arg2: i32, %arg3: memref<8x32xf32, #tpu.memory_space<vmem>>, %arg4: memref<128x32xf32, #tpu.memory_space<vmem>>, %arg5: memref<8x1xf32, #tpu.memory_space<vmem>>, %arg6: memref<1x128xf32, #tpu.memory_space<vmem>>, %arg7: memref<8x128xf32, #tpu.memory_space<vmem>>, %arg8: memref<8x128xf32, #tpu.memory_space<vmem>>) attributes {dimension_semantics = [#tpu.dimension_semantics<parallel>, #tpu.dimension_semantics<parallel>, #tpu.dimension_semantics<arbitrary>], iteration_bounds = array<i64: 1, 1, 1>, scalar_prefetch = 0 : i64, scratch_operands = 1 : i64, tpu.core_type = #tpu.core_type<tc>, window_params = [{transform_indices = @transform_0, window_bounds = array<i64: 8, 32>}, {transform_indices = @transform_1, window_bounds = array<i64: 128, 32>}, {transform_indices = @transform_2, window_bounds = array<i64: 8, 1>}, {transform_indices = @transform_3, window_bounds = array<i64: 1, 128>}, {transform_indices = @transform_4, window_bounds = array<i64: 8, 128>}]} {
    %c0_i32 = arith.constant 0 : i32
    %0 = arith.cmpi eq, %arg2, %c0_i32 : i32
    %1 = arith.extui %0 : i1 to i32
    %c0_i32_0 = arith.constant 0 : i32
    %2 = arith.cmpi ne, %1, %c0_i32_0 : i32
    scf.if %2 {
      %cst_10 = arith.constant 0.000000e+00 : f32
      %12 = vector.broadcast %cst_10 : f32 to vector<8x128xf32>
      %c0_11 = arith.constant 0 : index
      %c0_12 = arith.constant 0 : index
      %13 = vector.load %arg8[%c0_11, %c0_12] : memref<8x128xf32, #tpu.memory_space<vmem>>, vector<8x128xf32>
      tpu.vector_store %arg8[%c0_11, %c0_12], %12 {strides = array<i32>} : memref<8x128xf32, #tpu.memory_space<vmem>>, vector<8x128xf32>,
    } else {
    }
    %c0 = arith.constant 0 : index
    %c0_1 = arith.constant 0 : index
    %3 = vector.load %arg8[%c0, %c0_1] : memref<8x128xf32, #tpu.memory_space<vmem>>, vector<8x128xf32>
    %c0_2 = arith.constant 0 : index
    %c0_3 = arith.constant 0 : index
    %4 = vector.load %arg3[%c0_2, %c0_3] : memref<8x32xf32, #tpu.memory_space<vmem>>, vector<8x32xf32>
    %c0_4 = arith.constant 0 : index
    %c0_5 = arith.constant 0 : index
    %5 = vector.load %arg4[%c0_4, %c0_5] : memref<128x32xf32, #tpu.memory_space<vmem>>, vector<128x32xf32>
    %cst = arith.constant dense<0.000000e+00> : vector<8x128xf32>
    %6 = tpu.matmul %4, %5, %cst {dimension_numbers = #tpu.dot_dimension_numbers<[1], [1], [0], [0], [0, 0, 1, 0], [], []>} : vector<8x32xf32>, vector<128x32xf32>, vector<8x128xf32> -> vector<8x128xf32>
    %7 = arith.addf %3, %6 : vector<8x128xf32>
    %c0_6 = arith.constant 0 : index
    %c0_7 = arith.constant 0 : index
    %8 = vector.load %arg8[%c0_6, %c0_7] : memref<8x128xf32, #tpu.memory_space<vmem>>, vector<8x128xf32>
    tpu.vector_store %arg8[%c0_6, %c0_7], %7 {strides = array<i32>} : memref<8x128xf32, #tpu.memory_space<vmem>>, vector<8x128xf32>,
    %c0_i32_8 = arith.constant 0 : i32
    %9 = arith.cmpi eq, %arg2, %c0_i32_8 : i32
    %10 = arith.extui %9 : i1 to i32
    %c0_i32_9 = arith.constant 0 : i32
    %11 = arith.cmpi ne, %10, %c0_i32_9 : i32
    scf.if %11 {
      %c0_10 = arith.constant 0 : index
      %c0_11 = arith.constant 0 : index
      %12 = vector.load %arg8[%c0_10, %c0_11] : memref<8x128xf32, #tpu.memory_space<vmem>>, vector<8x128xf32>
      %c0_12 = arith.constant 0 : index
      %c0_13 = arith.constant 0 : index
      %13 = vector.load %arg5[%c0_12, %c0_13] : memref<8x1xf32, #tpu.memory_space<vmem>>, vector<8x1xf32>
      %14 = vector.broadcast %13 : vector<8x1xf32> to vector<8x128xf32>
      %15 = arith.mulf %12, %14 : vector<8x128xf32>
      %c0_14 = arith.constant 0 : index
      %c0_15 = arith.constant 0 : index
      %16 = vector.load %arg6[%c0_14, %c0_15] : memref<1x128xf32, #tpu.memory_space<vmem>>, vector<1x128xf32>
      %17 = vector.broadcast %16 : vector<1x128xf32> to vector<8x128xf32>
      %18 = arith.mulf %15, %17 : vector<8x128xf32>
      %c0_16 = arith.constant 0 : index
      %c0_17 = arith.constant 0 : index
      %19 = vector.load %arg7[%c0_16, %c0_17] : memref<8x128xf32, #tpu.memory_space<vmem>>, vector<8x128xf32>
      tpu.vector_store %arg7[%c0_16, %c0_17], %18 {strides = array<i32>} : memref<8x128xf32, #tpu.memory_space<vmem>>, vector<8x128xf32>,
    } else {
    }
    return
  }
  func.func @transform_0(%arg0: i32, %arg1: i32, %arg2: i32) -> (i32, i32) {
    %c0_i32 = arith.constant 0 : i32
    return %arg0, %arg2 : i32, i32
  }
  func.func @transform_1(%arg0: i32, %arg1: i32, %arg2: i32) -> (i32, i32) {
    %c0_i32 = arith.constant 0 : i32
    return %arg1, %arg2 : i32, i32
  }
  func.func @transform_2(%arg0: i32, %arg1: i32, %arg2: i32) -> (i32, i32) {
    %c0_i32 = arith.constant 0 : i32
    %c0_i32_0 = arith.constant 0 : i32
    return %arg0, %c0_i32 : i32, i32
  }
  func.func @transform_3(%arg0: i32, %arg1: i32, %arg2: i32) -> (i32, i32) {
    %c0_i32 = arith.constant 0 : i32
    %c0_i32_0 = arith.constant 0 : i32
    return %c0_i32, %arg1 : i32, i32
  }
  func.func @transform_4(%arg0: i32, %arg1: i32, %arg2: i32) -> (i32, i32) {
    %c0_i32 = arith.constant 0 : i32
    return %arg0, %arg1 : i32, i32
  }
}

</mosaic_0001>

<bundles_post_ra>
// kernel: tpu_custom_call.1
= control target key start
LH: loop header
LB: loop body
LE: loop exit
PB: predicated region body
PF: predicated region fallthrough
CT: control target
= control target key end

     0   :  { %vm41_vm0 = vcmask 261120   ;;  %s299_s0 = inlined_call_operand.vmem [shape: f32[8,32], index: 0, kind: input, shape index: {}]   ;;  %s300_s1 = inlined_call_operand.vmem [shape: f32[128,32], index: 1, kind: input, shape index: {}]   ;;  %s301_s2 = inlined_call_operand.vmem [shape: f32[8,1], index: 2, kind: input, shape index: {}]   ;;  %s302_s3 = inlined_call_operand.vmem [shape: f32[1,128], index: 3, kind: input, shape index: {}]   ;;  %s303_s4 = inlined_call_operand.hbm [shape: f32[8,128], index: 4, kind: output, shape index: {}]  }
   0x1   :  { %v40_v0 = vld [vmem:[%s300_s1 + $0x78] sm:$0xff]  ;;  %v39_v1 = vld [vmem:[%s300_s1 + $0x70] sm:$0xff] }
   0x2   :  { %148 = vmatpush.xpose.msk.msra.mxu0 %vm41_vm0, %v40_v0 }
   0x3   :  { %9 = vsyncpa [#allocation4], 0  ;;  %v38_v2 = vld [vmem:[%s300_s1 + $0x68] sm:$0xff]  ;;  %v37_v3 = vld [vmem:[%s300_s1 + $0x60] sm:$0xff]  ;;  %v195_v10 = vmov 0   ;;  %s196_s26 = smov [#allocation3]  }
   0x4   :  { %v36_v4 = vld [vmem:[%s300_s1 + $0x58] sm:$0xff]  ;;  %v35_v5 = vld [vmem:[%s300_s1 + $0x50] sm:$0xff]  ;;  %v34_v6 = vld [vmem:[%s300_s1 + $0x48] sm:$0xff]  ;;  %167 = vset.pattern.permute.xlu0 %v195_v10  ;;  %s137_s27 = sshll.u32 %s196_s26, 4  ;;  %s138_s27 = int_to_ptr.vmem [resolvable:$true] %s137_s27 }
   0x5   :  { %v33_v7 = vld [vmem:[%s300_s1 + $0x40] sm:$0xff]  ;;  %v32_v8 = vld [vmem:[%s300_s1 + $0x38] sm:$0xff]  ;;  %v31_v11 = vld [vmem:[%s300_s1 + $0x30] sm:$0xff] }
   0x6   :  { %149 = vmatpush.xpose.msk.msra.mxu0 %vm41_vm0, %v39_v1  ;;  %v119_v9 = vld [vmem:[%s301_s2] sm:$0xff]  ;;  %v30_v12 = vld [vmem:[%s300_s1 + $0x28] sm:$0xff]  ;;  %v28_v14 = vld [vmem:[%s300_s1 + $0x18] sm:$0xff] }
   0x7   :  { %122 = vperm.xlu0 %167, %v119_v9   ;;  %v29_v13 = vld [vmem:[%s300_s1 + $0x20] sm:$0xff]  ;;  %v27_v15 = vld [vmem:[%s300_s1 + $0x10] sm:$0xff]  ;;  %v26_v16 = vld [vmem:[%s300_s1 + $0x8] sm:$0xff] }
   0x8   :  { %v25_v17 = vld [vmem:[%s300_s1] sm:$0xff]  ;;  %s139_s1 = sshll.u32 %s303_s4, 4  ;;  %s140_s1 = int_to_ptr.hbm [resolvable:$true] %s139_s1 }
   0x9   :  { %v24_v18 = vld [vmem:[%s299_s0] sm:$0xff] }
   0xa   :  { %150 = vmatpush.xpose.msk.msra.mxu0 %vm41_vm0, %v38_v2  ;;  %v168_v20 = vld [vmem:[%s302_s3] ss:$0 sm:$0xff] }
   0xe   :  { %151 = vmatpush.xpose.msk.msra.mxu0 %vm41_vm0, %v37_v3 }
  0x12   :  { %152 = vmatpush.xpose.msk.msra.mxu0 %vm41_vm0, %v36_v4 }
  0x16   :  { %153 = vmatpush.xpose.msk.msra.mxu0 %vm41_vm0, %v35_v5 }
  0x1a   :  { %154 = vmatpush.xpose.msk.msra.mxu0 %vm41_vm0, %v34_v6 }
  0x1e   :  { %155 = vmatpush.xpose.msk.msra.mxu0 %vm41_vm0, %v33_v7 }
  0x22   :  { %156 = vmatpush.xpose.msk.msra.mxu0 %vm41_vm0, %v32_v8 }
  0x26   :  { %157 = vmatpush.xpose.msk.msra.mxu0 %vm41_vm0, %v31_v11 }
  0x2a   :  { %158 = vmatpush.xpose.msk.msra.mxu0 %vm41_vm0, %v30_v12 }
  0x2e   :  { %159 = vmatpush.xpose.msk.msra.mxu0 %vm41_vm0, %v29_v13 }
  0x32   :  { %160 = vmatpush.xpose.msk.msra.mxu0 %vm41_vm0, %v28_v14 }
  0x36   :  { %161 = vmatpush.xpose.msk.msra.mxu0 %vm41_vm0, %v27_v15 }
  0x3a   :  { %162 = vmatpush.xpose.msk.msra.mxu0 %vm41_vm0, %v26_v16 }
  0x3e   :  { %163 = vmatpush.xpose.msk.msra.mxu0 %vm41_vm0, %v25_v17 }
  0x41   :  { %164 = vmatmul.msk.f32.vlgmr.msra.gmra.mxu0 %vm41_vm0, %v24_v18 }
  0x79   :  { %v123_v19 = vpop.permute.xlu0 %122 }
  0xbe   :  { %v110_v21 = vpop.f32.mrf.mxu0 }
  0xbf   :  { %v125_v22 = vmul.f32 %v123_v19, %v110_v21 }
  0xc1   :  { %v130_v23 = vmul.f32 %v168_v20, %v125_v22 }
  0xc3   :  { %131 = vst [vmem:[#allocation3] sm:$0xff] %v130_v23 }
  0xc4   :  { %142 = dma.vmem_to_hbm [thread:$0]  %s138_s27, 128, %s140_s1, [#allocation4]  }
  0xc5   :  { %193 = dma.done.wait [#allocation4], 128  }
  0xc6   :  { %194 = vsyncadd [#allocation4], 4294967168 }
  0xc7   :  { %147 = vsyncpa [#allocation4], 1 }

</bundles_post_ra>
